<compile_context>
chip_gen: v7x
topology: tpu7x:2x2x1
jax: 0.10.0
libtpu: 0.0.40
codegen_flags: <defaults>
</compile_context>

<pallas_src>
import jax
import jax.numpy as jnp
from jax import lax
from jax.experimental import pallas as pl
from jax.experimental.pallas import tpu as pltpu


def _gp_l_kernel(dst_ref, src_ref, mask_ref, l_ref):
    TB, H, W = dst_ref.shape
    aligned = (H % 8 == 0) and (W % 128 == 0)

    def roll2d(x, shift, axis):
        s = shift % x.shape[axis]          # normalize negative shifts
        if s == 0:
            return x
        if aligned:
            return pltpu.roll(x, s, axis)  # XLU rotate, co-issues with VPU work
        return jnp.roll(x, s, axis)        # fallback for unaligned tiles

    # Boundary masks hoisted: built once per tile, reused for dst and src.
    last_col = lax.broadcasted_iota(jnp.int32, (H, W), 1) == (W - 1)
    last_row = lax.broadcasted_iota(jnp.int32, (H, W), 0) == (H - 1)

    def grad_h(x):
        # normal_h: out[i, j] = x[i, j+1] - x[i, j], zero-padded at j == W-1
        return jnp.where(last_col, 0.0, roll2d(x, -1, 1)) - x

    def grad_w(x):
        # normal_w: out[i, j] = x[i+1, j] - x[i, j], zero-padded at i == H-1
        return jnp.where(last_row, 0.0, roll2d(x, -1, 0)) - x

    @pl.loop(0, TB)
    def _(i):
        dst = dst_ref[i].astype(jnp.float32)   # (H, W)
        src = src_ref[i].astype(jnp.float32)
        m = mask_ref[i].astype(jnp.float32)    # narrow mask cast in-kernel

        h_dst, w_dst = grad_h(dst), grad_w(dst)
        h_src, w_src = grad_h(src), grad_w(src)

        # Fused blend weights (X3/X4 round-trip rolls eliminated):
        #   Fh = 0.5*(h_dst*(2 - wh) + h_src*wh),  wh = m + roll(m, -1, W)
        #   Fv = 0.5*(w_dst*(2 - wv) + w_src*wv),  wv = m + roll(m, -1, H)
        wh = m + roll2d(m, -1, 1)
        wv = m + roll2d(m, -1, 0)
        fh = h_dst + 0.5 * wh * (h_src - h_dst)
        fv = w_dst + 0.5 * wv * (w_src - w_dst)

        # L = roll(Fh, 1, W) + roll(Fv, 1, H) - Fh - Fv
        l_ref[i] = (roll2d(fh, 1, 1) - fh) + (roll2d(fv, 1, 0) - fv)


def _pick_batch_tile(batch, plane_bytes, target_bytes=2 << 20):
    """Largest divisor of `batch` so each grid step streams ~target_bytes."""
    cap = max(1, target_bytes // max(plane_bytes, 1))
    if batch >= 2:
        cap = min(cap, max(1, batch // 2))   # keep >=2 grid steps (v7x megacore)
    cap = min(cap, batch)
    best = 1
    for d in range(1, cap + 1):
        if batch % d == 0:
            best = d
    return best


def gp_model_t1(src_im, dst_im, mask_im, bg_for_color):
    """Returns (X[..., 0], L), both shaped (N, C, H, W) float32."""
    N, C, H, W = src_im.shape
    B = N * C

    dst = dst_im.reshape(B, H, W)
    src = src_im.reshape(B, H, W)
    mask = mask_im.reshape(B, H, W)          # native (narrow) dtype, cast in-kernel

    plane_bytes = H * W * (dst.dtype.itemsize + src.dtype.itemsize
                           + mask.dtype.itemsize + 4)  # +4 for f32 L output
    TB = _pick_batch_tile(B, plane_bytes)

    per_step_bytes = 2 * TB * plane_bytes    # double-buffered I/O estimate
    vmem_limit = None
    if per_step_bytes > (24 << 20):
        vmem_limit = min(per_step_bytes + (8 << 20), 100 << 20)

    spec = pl.BlockSpec((TB, H, W), lambda b: (b, 0, 0))
    lap = pl.pallas_call(
        _gp_l_kernel,
        out_shape=jax.ShapeDtypeStruct((B, H, W), jnp.float32),
        grid=(B // TB,),
        in_specs=[spec, spec, spec],
        out_specs=spec,
        compiler_params=pltpu.CompilerParams(
            dimension_semantics=("parallel",),
            vmem_limit_bytes=vmem_limit),
    )(dst, src, mask)

    # X[..., 0] = color*(1-m) + color*m == bg_for_color (identical for finite
    # mask values); the redundant input/output path is dropped from the kernel.
    x0 = bg_for_color.astype(jnp.float32)
    return x0, lap.reshape(N, C, H, W)


def _reference(src_im, dst_im, mask_im, bg_for_color):
    """Pure-JAX reference mirroring the PyTorch forward."""
    src = src_im.astype(jnp.float32)
    dst = dst_im.astype(jnp.float32)
    m = mask_im.astype(jnp.float32)[..., None]         # (N,C,H,W,1)
    color = bg_for_color.astype(jnp.float32)

    def grad_h(x):
        pad = jnp.pad(x, ((0, 0), (0, 0), (0, 0), (0, 1)))
        return pad[:, :, :, 1:] - x

    def grad_w(x):
        pad = jnp.pad(x, ((0, 0), (0, 0), (0, 1), (0, 0)))
        return pad[:, :, 1:, :] - x

    def feature(im):
        h = grad_h(im)
        w = grad_w(im)
        return jnp.stack(
            [color, h, w, jnp.roll(h, 1, axis=3), jnp.roll(w, 1, axis=2)], axis=-1
        )

    X = feature(dst) * (1.0 - m) + feature(src) * m
    Fh = (X[..., 1] + jnp.roll(X[..., 3], -1, axis=3)) / 2
    Fv = (X[..., 2] + jnp.roll(X[..., 4], -1, axis=2)) / 2
    L = jnp.roll(Fh, 1, axis=3) + jnp.roll(Fv, 1, axis=2) - Fh - Fv
    return X[..., 0], L


if __name__ == "__main__":
    # W = 128 keeps the lane axis dense (full vregs / unmasked stores).
    N, C, H, W = 2, 3, 16, 128
    key = jax.random.PRNGKey(0)
    k1, k2, k3, k4 = jax.random.split(key, 4)
    src_im = jax.random.normal(k1, (N, C, H, W), dtype=jnp.float32)
    dst_im = jax.random.normal(k2, (N, C, H, W), dtype=jnp.float32)
    mask_im = (jax.random.uniform(k3, (N, C, H, W)) > 0.5).astype(jnp.int8)
    bg_for_color = jax.random.normal(k4, (N, C, H, W), dtype=jnp.float32)

    fwd = jax.jit(gp_model_t1)
    x0, L = fwd(src_im, dst_im, mask_im, bg_for_color)
    jax.block_until_ready((x0, L))

    x0_ref, L_ref = _reference(src_im, dst_im, mask_im, bg_for_color)
    assert jnp.allclose(x0, x0_ref, atol=1e-5), "X[...,0] mismatch"
    assert jnp.allclose(L, L_ref, atol=1e-5), "L mismatch"

    print("KERNEL_OK")
</pallas_src>

<mosaic_0001>
module attributes {stable_mosaic.version = 11 : i64} {
  func.func @_gp_l_kernel(%arg0: i32, %arg1: memref<3x16x128xf32, #tpu.memory_space<vmem>>, %arg2: memref<3x16x128xf32, #tpu.memory_space<vmem>>, %arg3: memref<3x16x128xi8, #tpu.memory_space<vmem>>, %arg4: memref<3x16x128xf32, #tpu.memory_space<vmem>>) attributes {dimension_semantics = [#tpu.dimension_semantics<parallel>], iteration_bounds = array<i64: 2>, scalar_prefetch = 0 : i64, scratch_operands = 0 : i64, tpu.core_type = #tpu.core_type<tc>, window_params = [{transform_indices = @transform_0, window_bounds = array<i64: 3, 16, 128>}, {transform_indices = @transform_1, window_bounds = array<i64: 3, 16, 128>}, {transform_indices = @transform_2, window_bounds = array<i64: 3, 16, 128>}, {transform_indices = @transform_3, window_bounds = array<i64: 3, 16, 128>}]} {
    %0 = tpu.iota {dimensions = array<i32: 1>} : vector<16x128xi32>
    %c127_i32 = arith.constant 127 : i32
    %1 = vector.broadcast %c127_i32 : i32 to vector<16x128xi32>
    %2 = arith.cmpi eq, %0, %1 : vector<16x128xi32>
    %3 = tpu.iota {dimensions = array<i32: 0>} : vector<16x128xi32>
    %c15_i32 = arith.constant 15 : i32
    %4 = vector.broadcast %c15_i32 : i32 to vector<16x128xi32>
    %5 = arith.cmpi eq, %3, %4 : vector<16x128xi32>
    %c0_i32 = arith.constant 0 : i32
    %c3_i32 = arith.constant 3 : i32
    %6 = arith.addi %c0_i32, %c3_i32 : i32
    %c1_i32 = arith.constant 1 : i32
    scf.for %arg5 = %c0_i32 to %6 step %c1_i32  : i32 {
      %c1_i32_1 = arith.constant 1 : i32
      %7 = arith.muli %arg5, %c1_i32_1 : i32
      %c0_i32_2 = arith.constant 0 : i32
      %8 = arith.addi %c0_i32_2, %7 : i32
      %9 = arith.index_cast %8 : i32 to index
      %c0 = arith.constant 0 : index
      %c0_3 = arith.constant 0 : index
      %10 = vector.load %arg1[%9, %c0, %c0_3] : memref<3x16x128xf32, #tpu.memory_space<vmem>>, vector<1x16x128xf32>
      %11 = vector.shape_cast %10 : vector<1x16x128xf32> to vector<16x128xf32>
      %12 = arith.index_cast %8 : i32 to index
      %c0_4 = arith.constant 0 : index
      %c0_5 = arith.constant 0 : index
      %13 = vector.load %arg2[%12, %c0_4, %c0_5] : memref<3x16x128xf32, #tpu.memory_space<vmem>>, vector<1x16x128xf32>
      %14 = vector.shape_cast %13 : vector<1x16x128xf32> to vector<16x128xf32>
      %15 = arith.index_cast %8 : i32 to index
      %c0_6 = arith.constant 0 : index
      %c0_7 = arith.constant 0 : index
      %16 = vector.load %arg3[%15, %c0_6, %c0_7] : memref<3x16x128xi8, #tpu.memory_space<vmem>>, vector<1x16x128xi8>
      %17 = vector.shape_cast %16 : vector<1x16x128xi8> to vector<16x128xi8>
      %18 = arith.sitofp %17 : vector<16x128xi8> to vector<16x128xf32>
      %c127_i32_8 = arith.constant 127 : i32
      %19 = tpu.dynamic_rotate %11 by %c127_i32_8 dim 1 : vector<16x128xf32>, i32 -> vector<16x128xf32>
      %cst = arith.constant 0.000000e+00 : f32
      %20 = vector.broadcast %cst : f32 to vector<16x128xf32>
      %21 = arith.select %2, %20, %19 : vector<16x128xi1>, vector<16x128xf32>
      %22 = arith.subf %21, %11 : vector<16x128xf32>
      %c15_i32_9 = arith.constant 15 : i32
      %23 = tpu.dynamic_rotate %11 by %c15_i32_9 dim 0 : vector<16x128xf32>, i32 -> vector<16x128xf32>
      %cst_10 = arith.constant 0.000000e+00 : f32
      %24 = vector.broadcast %cst_10 : f32 to vector<16x128xf32>
      %25 = arith.select %5, %24, %23 : vector<16x128xi1>, vector<16x128xf32>
      %26 = arith.subf %25, %11 : vector<16x128xf32>
      %c127_i32_11 = arith.constant 127 : i32
      %27 = tpu.dynamic_rotate %14 by %c127_i32_11 dim 1 : vector<16x128xf32>, i32 -> vector<16x128xf32>
      %cst_12 = arith.constant 0.000000e+00 : f32
      %28 = vector.broadcast %cst_12 : f32 to vector<16x128xf32>
      %29 = arith.select %2, %28, %27 : vector<16x128xi1>, vector<16x128xf32>
      %30 = arith.subf %29, %14 : vector<16x128xf32>
      %c15_i32_13 = arith.constant 15 : i32
      %31 = tpu.dynamic_rotate %14 by %c15_i32_13 dim 0 : vector<16x128xf32>, i32 -> vector<16x128xf32>
      %cst_14 = arith.constant 0.000000e+00 : f32
      %32 = vector.broadcast %cst_14 : f32 to vector<16x128xf32>
      %33 = arith.select %5, %32, %31 : vector<16x128xi1>, vector<16x128xf32>
      %34 = arith.subf %33, %14 : vector<16x128xf32>
      %c127_i32_15 = arith.constant 127 : i32
      %35 = tpu.dynamic_rotate %18 by %c127_i32_15 dim 1 : vector<16x128xf32>, i32 -> vector<16x128xf32>
      %36 = arith.addf %18, %35 : vector<16x128xf32>
      %c15_i32_16 = arith.constant 15 : i32
      %37 = tpu.dynamic_rotate %18 by %c15_i32_16 dim 0 : vector<16x128xf32>, i32 -> vector<16x128xf32>
      %38 = arith.addf %18, %37 : vector<16x128xf32>
      %cst_17 = arith.constant 5.000000e-01 : f32
      %39 = vector.broadcast %cst_17 : f32 to vector<16x128xf32>
      %40 = arith.mulf %39, %36 : vector<16x128xf32>
      %41 = arith.subf %30, %22 : vector<16x128xf32>
      %42 = arith.mulf %40, %41 : vector<16x128xf32>
      %43 = arith.addf %22, %42 : vector<16x128xf32>
      %cst_18 = arith.constant 5.000000e-01 : f32
      %44 = vector.broadcast %cst_18 : f32 to vector<16x128xf32>
      %45 = arith.mulf %44, %38 : vector<16x128xf32>
      %46 = arith.subf %34, %26 : vector<16x128xf32>
      %47 = arith.mulf %45, %46 : vector<16x128xf32>
      %48 = arith.addf %26, %47 : vector<16x128xf32>
      %c1_i32_19 = arith.constant 1 : i32
      %49 = tpu.dynamic_rotate %43 by %c1_i32_19 dim 1 : vector<16x128xf32>, i32 -> vector<16x128xf32>
      %50 = arith.subf %49, %43 : vector<16x128xf32>
      %c1_i32_20 = arith.constant 1 : i32
      %51 = tpu.dynamic_rotate %48 by %c1_i32_20 dim 0 : vector<16x128xf32>, i32 -> vector<16x128xf32>
      %52 = arith.subf %51, %48 : vector<16x128xf32>
      %53 = arith.addf %50, %52 : vector<16x128xf32>
      %54 = arith.index_cast %8 : i32 to index
      %c0_21 = arith.constant 0 : index
      %c0_22 = arith.constant 0 : index
      %55 = vector.load %arg4[%54, %c0_21, %c0_22] : memref<3x16x128xf32, #tpu.memory_space<vmem>>, vector<1x16x128xf32>
      %56 = vector.shape_cast %55 : vector<1x16x128xf32> to vector<16x128xf32>
      %57 = vector.shape_cast %53 : vector<16x128xf32> to vector<1x16x128xf32>
      tpu.vector_store %arg4[%54, %c0_21, %c0_22], %57 {strides = array<i32>} : memref<3x16x128xf32, #tpu.memory_space<vmem>>, vector<1x16x128xf32>,
    }
    %c3_i32_0 = arith.constant 3 : i32
    return
  }
  func.func @transform_0(%arg0: i32) -> (i32, i32, i32) {
    %c0_i32 = arith.constant 0 : i32
    %c0_i32_0 = arith.constant 0 : i32
    %c0_i32_1 = arith.constant 0 : i32
    return %arg0, %c0_i32, %c0_i32_0 : i32, i32, i32
  }
  func.func @transform_1(%arg0: i32) -> (i32, i32, i32) {
    %c0_i32 = arith.constant 0 : i32
    %c0_i32_0 = arith.constant 0 : i32
    %c0_i32_1 = arith.constant 0 : i32
    return %arg0, %c0_i32, %c0_i32_0 : i32, i32, i32
  }
  func.func @transform_2(%arg0: i32) -> (i32, i32, i32) {
    %c0_i32 = arith.constant 0 : i32
    %c0_i32_0 = arith.constant 0 : i32
    %c0_i32_1 = arith.constant 0 : i32
    return %arg0, %c0_i32, %c0_i32_0 : i32, i32, i32
  }
  func.func @transform_3(%arg0: i32) -> (i32, i32, i32) {
    %c0_i32 = arith.constant 0 : i32
    %c0_i32_0 = arith.constant 0 : i32
    %c0_i32_1 = arith.constant 0 : i32
    return %arg0, %c0_i32, %c0_i32_0 : i32, i32, i32
  }
}

</mosaic_0001>

<bundles_post_ra>
// kernel: gp_model_t1.1
= control target key start
LH: loop header
LB: loop body
LE: loop exit
PB: predicated region body
PF: predicated region fallthrough
CT: control target
= control target key end

     0   :  { %s1153_s0 = inlined_call_operand.hbm [shape: f32[6,16,128], index: 0, kind: input, shape index: {}]   ;;  %s1154_s1 = inlined_call_operand.hbm [shape: f32[6,16,128], index: 1, kind: input, shape index: {}]   ;;  %s1155_s2 = inlined_call_operand.hbm [shape: s8[6,16,128], index: 2, kind: input, shape index: {}]   ;;  %s1156_s3 = inlined_call_operand.hbm [shape: f32[6,16,128], index: 3, kind: output, shape index: {}]  }
   0x1   :  { %1161 = sst [smem:[#allocation12_spill]] %s1153_s0 }
   0x2   :  { %8 = vsyncpa [#allocation3], 0 }
   0x3   :  { %10 = vsyncpa [#allocation3 + $0x1], 0 }
   0x4   :  { %11 = vsyncpa [#allocation6], 0 }
   0x5   :  { %13 = vsyncpa [#allocation6 + $0x1], 0 }
   0x6   :  { %14 = vsyncpa [#allocation4], 0 }
   0x7   :  { %16 = vsyncpa [#allocation4 + $0x1], 0  ;;  %s839_s12 = smov 0   ;;  %s841_s13 = smov 0  }
   0x8   :  { %s843_s14 = smov 0   ;;  %s845_s15 = smov 0  }
   0x9 LB: > { %s860_s16 = sadd.s32 4294967295, %s801_s15   ;;  %s526_s17 = sadd.s32 4294967294, %s801_s15   ;;  %s801_s15 = sphi %s845_s15, %s1180_s15   ;;  %s797_s14 = sphi %s843_s14, %s1179_s14   ;;  %s793_s13 = sphi %s841_s13, %s1178_s13   ;;  %s789_s12 = sphi %s839_s12, %s1177_s12  }
   0xa   : > { %s864_s18 = sadd.s32 1, %s801_s15   ;;  %s29_s19 = sadd.s32 1, %s797_s14 }
   0xb   : > { %s26_s20 = ssub.s32 %s801_s15, %s864_s18  ;;  %p36_p0 = scmp.ne.s32.totalorder %s797_s14, %s793_s13 }
   0xc   : > { %p27_p1 = scmp.eq.s32.totalorder %s26_s20, 0  ;;  %p37_p2 = scmp.eq.s32.totalorder %s801_s15, 0 }
   0xd   : > { %p42_p3 = scmp.ne.s32.totalorder %s793_s13, %s789_s12  ;;  %p43_p4 = scmp.eq.s32.totalorder %s860_s16, 0 }
   0xe   : > { %s876_s21 = scalar_select %p27_p1, %s797_s14, %s29_s19  }
   0xf   : > { %p38_p5 = por %p37_p2, %p36_p0  ;;  %p878_p6 = por %p43_p4, %p42_p3 }
  0x10   : > { %p118_p7 = scmp.eq.s32.totalorder %s860_s16, 1  ;;  %p124_p8 = scmp.eq.s32.totalorder %s526_s17, 1 }
  0x11   : > { %s1162_s22 = scalar_select %p878_p6, 1, 0 }
  0x12   : > { %p587_p10 = scmp.lt.s32.totalorder %s801_s15, 2  ;;  %p885_p11 = por %p118_p7, %p36_p0 }
  0x13   : > { %p889_p12 = por %p124_p8, %p42_p3  ;;  %s894_s25 = sand.u32 1, %s797_s14  }
  0x14   : > { %s1163_s23 = scalar_select %p885_p11, 1, 0 }
  0x15   : > { %s1164_s24 = scalar_select %p889_p12, 1, 0 }
  0x16   : > { %s552_s26 = smul.u32 768, %s801_s15  ;;  %p898_p13 = pnand %p587_p10, %p38_p5 }
  0x17   : > { %s560_s27 = smul.u32 48, %s894_s25  ;;  %s166_s29 = sand.u32 1, %s801_s15  }
  0x18   : > { %s908_s5 = scalar_lea.hbm %s1154_s1, %s552_s26  ;;  %s915_s8 = scalar_lea.sflag [#allocation6], %s166_s29 }
  0x19   : > { %s170_s6 = scalar_lea.vmem [#allocation5], %s560_s27  ;;  %s637_s9 = scalar_lea.hbm %s908_s5, 768 }
  0x1a   : > { %s178_s7 = sshll.u32 %s170_s6, 4  ;;  %p638_p1 = scmp.ne.s32.totalorder %s908_s5, %s637_s9  ;;  %s912_s7 = int_to_ptr.vmem [resolvable:$true] %s178_s7 }
  0x1b   : > { %p921_p2 = pneg %p898_p13  ;;  %s642_s19 = scalar_lea.hbm %s1154_s1, 1536 }
  0x1c   : > { %p643_p5 = scmp.lt.u32.totalorder %s908_s5, %s1154_s1  ;;  %p644_p7 = scmp.lt.u32.totalorder %s642_s19, %s637_s9 }
  0x1d   : > { %p640_p3 = pnand %p921_p2, %p638_p1  ;;  %p646_p10 = scmp.lt.u32.totalorder %s637_s9, %s908_s5 }
  0x1e   : > { %p645_p8 = por %p644_p7, %p643_p5 }
  0x1f   : > { %p641_p4 = pneg %p640_p3 }
  0x20   : > { %p647_p9 = por %p646_p10, %p645_p8 }
  0x22   : > { %p648_p0 = pnand %p647_p9, %p641_p4 }
  0x24   : > { %651 = shalt.err (!%p648_p0)
}
  0x25   : > { %s652_s29 = scalar_lea.vmem %s912_s7, 768  ;;  %s807_s4 = smov [#allocation5]  }
  0x26   : > { %p653_p1 = scmp.ne.s32.totalorder %s912_s7, %s652_s29  ;;  %s657_s6 = sshll.u32 %s807_s4, 4  ;;  %s658_s6 = int_to_ptr.vmem [resolvable:$false] %s657_s6 }
  0x27   : > { %s659_s11 = scalar_lea.vmem %s658_s6, 1536  ;;  %p660_p11 = scmp.lt.s32.totalorder %s912_s7, %s658_s6 }
  0x28   : > { %p655_p3 = pnand %p653_p1, %p921_p2  ;;  %p661_p6 = scmp.lt.s32.totalorder %s659_s11, %s652_s29 }
  0x2a   : > { %p656_p12 = pneg %p655_p3  ;;  %p662_p5 = por %p661_p6, %p660_p11 }
  0x2c   : > { %p663_p7 = pnand %p662_p5, %p656_p12 }
  0x2e   : > { %666 = shalt.err (!%p663_p7)
}
  0x2f   : > { %s1159_s9 = smov 128   ;;  %s1160_s17 = smov 8  }
  0x30   : > { %579 = dma.hbm_to_vmem [thread:$0]  (!%p898_p13), %s908_s5, 768, %s912_s7, %s915_s8, %s1159_s9, %s1159_s9, %s1160_s17  }
  0x31   : > { %p208_p6 = scmp.lt.s32.totalorder %s801_s15, 3  ;;  %s1167_s0 = sld [smem:[#allocation12_spill]] }
  0x32   : > { %p1168_p9 = scmp.ge.s32.totalorder %s801_s15, 1  ;;  %s148_s4 = scalar_lea.vmem [#allocation2], %s560_s27 }
  0x33   : > { %s156_s6 = sshll.u32 %s148_s4, 4  ;;  %s562_s5 = smul.u32 12, %s894_s25  ;;  %s964_s6 = int_to_ptr.vmem [resolvable:$true] %s156_s6 }
  0x34   : > { %p958_p11 = pnand %p1168_p9, %p208_p6  ;;  %s145_s7 = scalar_lea.sflag [#allocation3], %s894_s25 }
  0x36   : > { %s1169_s29 = scalar_select %p958_p11, 1, 0 }
  0x37   : > { %s954_s30 = scalar_lea.hbm %s1167_s0, %s552_s26  ;;  %s672_s20 = scalar_lea.hbm %s1167_s0, 1536 }
  0x38   : > { %s667_s11 = scalar_lea.hbm %s954_s30, 768  ;;  %p673_p8 = scmp.lt.u32.totalorder %s954_s30, %s1167_s0 }
  0x39   : > { %p668_p12 = scmp.ne.s32.totalorder %s954_s30, %s667_s11  ;;  %p674_p10 = scmp.lt.u32.totalorder %s672_s20, %s667_s11 }
  0x3a   : > { %p676_p3 = scmp.lt.u32.totalorder %s667_s11, %s954_s30 }
  0x3b   : > { %p670_p0 = pnand %p668_p12, %p921_p2  ;;  %p675_p1 = por %p674_p10, %p673_p8 }
  0x3d   : > { %p671_p4 = pneg %p670_p0  ;;  %p677_p5 = por %p676_p3, %p675_p1 }
  0x3f   : > { %p678_p7 = pnand %p677_p5, %p671_p4 }
  0x41   : > { %681 = shalt.err (!%p678_p7)
}
  0x42   : > { %s682_s27 = scalar_lea.vmem %s964_s6, 768  ;;  %s810_s4 = smov [#allocation2]  }
  0x43   : > { %p683_p6 = scmp.ne.s32.totalorder %s964_s6, %s682_s27  ;;  %s687_s26 = sshll.u32 %s810_s4, 4  ;;  %s688_s26 = int_to_ptr.vmem [resolvable:$false] %s687_s26 }
  0x44   : > { %s689_s9 = scalar_lea.vmem %s688_s26, 1536  ;;  %p690_p0 = scmp.lt.s32.totalorder %s964_s6, %s688_s26 }
  0x45   : > { %p685_p9 = pnand %p683_p6, %p921_p2  ;;  %p691_p11 = scmp.lt.s32.totalorder %s689_s9, %s682_s27 }
  0x47   : > { %p686_p12 = pneg %p685_p9  ;;  %p692_p8 = por %p691_p11, %p690_p0 }
  0x49   : > { %p693_p10 = pnand %p692_p8, %p686_p12 }
  0x4b   : > { %696 = shalt.err (!%p693_p10)
}
  0x4c   : > { %s1170_s17 = smov 8   ;;  %s1171_s11 = smov 128  }
  0x4d   : > { %576 = dma.hbm_to_vmem [thread:$0]  (!%p898_p13), %s954_s30, 768, %s964_s6, %s145_s7, %s1171_s11, %s1171_s11, %s1170_s17  }
  0x4e   : > { %s554_s19 = smul.u32 192, %s801_s15  ;;  %s192_s20 = scalar_lea.vmem [#allocation7], %s562_s5 }
  0x4f   : > { %s200_s27 = sshll.u32 %s192_s20, 4  ;;  %s702_s6 = scalar_lea.hbm %s1155_s2, 384  ;;  %s1002_s27 = int_to_ptr.vmem [resolvable:$true] %s200_s27 }
  0x50   : > { %s1000_s9 = scalar_lea.hbm %s1155_s2, %s554_s19 }
  0x51   : > { %s697_s0 = scalar_lea.hbm %s1000_s9, 192  ;;  %p703_p3 = scmp.lt.u32.totalorder %s1000_s9, %s1155_s2 }
  0x52   : > { %p698_p11 = scmp.ne.s32.totalorder %s1000_s9, %s697_s0  ;;  %p704_p5 = scmp.lt.u32.totalorder %s702_s6, %s697_s0 }
  0x53   : > { %p706_p6 = scmp.lt.u32.totalorder %s697_s0, %s1000_s9 }
  0x54   : > { %p700_p4 = pnand %p698_p11, %p921_p2  ;;  %p705_p7 = por %p704_p5, %p703_p3 }
  0x56   : > { %p701_p1 = pneg %p700_p4  ;;  %p707_p9 = por %p706_p6, %p705_p7 }
  0x58   : > { %p708_p12 = pnand %p707_p9, %p701_p1 }
  0x5a   : > { %711 = shalt.err (!%p708_p12)
}
  0x5b   : > { %s712_s17 = scalar_lea.vmem %s1002_s27, 192  ;;  %s811_s11 = smov [#allocation7]  }
  0x5c   : > { %p713_p0 = scmp.ne.s32.totalorder %s1002_s27, %s712_s17  ;;  %s717_s19 = sshll.u32 %s811_s11, 4  ;;  %s718_s19 = int_to_ptr.vmem [resolvable:$false] %s717_s19 }
  0x5d   : > { %s719_s20 = scalar_lea.vmem %s718_s19, 384  ;;  %p720_p11 = scmp.lt.s32.totalorder %s1002_s27, %s718_s19 }
  0x5e   : > { %p715_p8 = pnand %p713_p0, %p921_p2  ;;  %p721_p4 = scmp.lt.s32.totalorder %s719_s20, %s712_s17 }
  0x60   : > { %p716_p10 = pneg %p715_p8  ;;  %p722_p3 = por %p721_p4, %p720_p11 }
  0x62   : > { %p723_p5 = pnand %p722_p3, %p716_p10 }
  0x64   : > { %726 = shalt.err (!%p723_p5)
}
  0x65   : > { %s812_s0 = smov 32   ;;  %s813_s4 = smov 2  }
  0x66   : > { %582 = dma.hbm_to_vmem [thread:$0]  (!%p898_p13), %s1000_s9, 192, %s1002_s27, %s915_s8, %s812_s0, %s812_s0, %s813_s4  }
  0x67   : > { %p1172_p2 = scmp.ne.s32.totalorder %s1169_s29, 0 }
  0x68   : > { %s1029_s10 = sand.u32 (!%p1172_p2), 1, %s793_s13   ;;  %p1173_p1 = scmp.ne.s32.totalorder (!%p1172_p2), %s1162_s22, 0 }
  0x69   : > { %212 = sbr.rel (%p1172_p2) target bundleno = 393 (0x189), region = 32  ;;  %s215_s30 = scalar_lea.sflag (!%p1172_p2), [#allocation3], %s1029_s10 }
  0x6a   : > { %s1032_s26 = smul.u32 (!%p1172_p2), 48, %s1029_s10 }
  0x6c   : > { %s218_s25 = scalar_lea.vmem (!%p1172_p2), [#allocation2], %s1032_s26 }
  0x70   : > { %776 = dma.done.wait (%p1173_p1), %s215_s30, 768  }
  0x71   : > { %778 = vsyncadd (%p1173_p1), %s215_s30, 4294966528  ;;  %s223_s28 = sand.u32 1, %s860_s16   ;;  %s227_s29 = scalar_lea.vmem [#allocation5], %s1032_s26 }
  0x72   : > { %s224_s8 = scalar_lea.sflag [#allocation6], %s223_s28 }
  0x73   : > { %780 = dma.done.wait (%p1173_p1), %s224_s8, 960  }
  0x74   : > { %782 = vsyncadd (%p1173_p1), %s224_s8, 4294966336  ;;  %s564_s27 = smul.u32 12, %s1029_s10  ;;  %v273_v0 = vlaneseq  ;;  %s268_s6 = scalar_lea.vmem [#allocation8], %s1032_s26 }
  0x75   : > { %s1059_s22 = smov 0  }
  0x76   : > { %v1047_v1 = vand.u32 127, %v273_v0  ;;  %v1049_v2 = vshrl.u32 %v273_v0, 7  ;;  %s1056_s9 = scalar_lea.vmem [#allocation7], %s564_s27 }
  0x78   : > { %vm275_vm0 = vcmp.eq.s32.totalorder %v1047_v1, 127  ;;  %v1053_v3 = vadd.s32 8, %v1049_v2 }
  0x7a   : > { %vm280_vm1 = vcmp.eq.s32.totalorder %v1053_v3, 15 }
  0x7b LB: >> { %s1065_s5 = sshll.u32 %s805_s22, 4  ;;  %s549_s7 = sshll.u32 %s805_s22, 2  ;;  %vm313_vm2 = vcmp.lt.s32.totalorder %v1049_v2, 7  ;;  %vm372_vm3 = vcmp.lt.s32.totalorder %v1049_v2, 1  ;;  %s805_s22 = sphi %s1059_s22, %s286_s22  }
  0x7c   : >> { %s291_s17 = scalar_lea.vmem %s227_s29, %s1065_s5 [#allocation5]  ;;  %s296_s11 = scalar_lea.vmem %s1056_s9, %s549_s7 [#allocation7] }
  0x7d   : >> { %v1072_v4 = vld [vmem:[%s291_s17] sm:$0xff]  ;;  %s288_s19 = scalar_lea.vmem %s218_s25, %s1065_s5 [#allocation2]  ;;  %s814_s20 = smov 127   ;;  %v293_v8 = vld [vmem:[%s291_s17 + $0x8] sm:$0xff] }
  0x7e   : >> { %v557_v5 = vld [vmem:[%s296_s11] sm:$0xf]   ;;  %320 = vrot.lane.b32.xlu1 %v1072_v4, %s814_s20  ;;  %v290_v10 = vld [vmem:[%s288_s19 + $0x8] sm:$0xff]  ;;  %s815_s0 = smov 1   ;;  %v328_v37 = vrot.slane %v1072_v4, 1  ;;  %v329_v38 = vrot.slane %v293_v8, 1  ;;  %s379_s4 = scalar_lea.vmem %s268_s6, %s1065_s5 [#allocation8] }
  0x7f   : >> { %v289_v6 = vld [vmem:[%s288_s19] sm:$0xff]  ;;  %v559_v7 = vunpack.c.1.s8 %v557_v5  ;;  %v558_v9 = vunpack.c.0.s8 %v557_v5  ;;  %v312_v40 = vrot.slane %v290_v10, 1  ;;  %s286_s22 = sadd.s32 1, %s805_s22  }
  0x80   : >> { %303 = vrot.lane.b32.xlu0 %v289_v6, %s814_s20  ;;  %v311_v39 = vrot.slane %v289_v6, 1  ;;  %v331_v41 = vsel %vm313_vm2, %v329_v38, %v328_v37  ;;  %v330_v45 = vsel %vm313_vm2, %v328_v37, %v329_v38  ;;  %p283_p13 = scmp.ge.s32.totalorder %s286_s22, 3  }
  0x81   : >> { %v302_v11 = vcvt.s32.f32 %v559_v7  ;;  %v301_v12 = vcvt.s32.f32 %v558_v9  ;;  %v333_v46 = vsel %vm280_vm1, 0.0, %v331_v41  ;;  %v334_v51 = vsub.f32 %v330_v45, %v1072_v4  ;;  %s555_s30 = smul.u32 (%p283_p13), 768, %s860_s16  ;;  %s397_s28 = sshll.u32 (%p283_p13), %s268_s6, 4  ;;  %s1109_s28 = int_to_ptr.vmem [resolvable:$true] %s397_s28 }
  0x82   : >> { %322 = vrot.lane.b32.xlu1 %v293_v8, %s814_s20  ;;  %v315_v44 = vsel %vm313_vm2, %v312_v40, %v311_v39  ;;  %v314_v47 = vsel %vm313_vm2, %v311_v39, %v312_v40  ;;  %v335_v52 = vsub.f32 %v333_v46, %v293_v8  ;;  %s383_s7 = scalar_lea.sflag (%p283_p13), [#allocation4], %s1029_s10  ;;  %s727_s22 = scalar_lea.vmem (%p283_p13), %s1109_s28, 768 }
  0x83   : >> { %v343_v42 = vrot.slane %v302_v11, 1  ;;  %v342_v43 = vrot.slane %v301_v12, 1  ;;  %v317_v48 = vsel %vm280_vm1, 0.0, %v315_v44  ;;  %v318_v53 = vsub.f32 %v314_v47, %v289_v6  ;;  %s1107_s5 = scalar_lea.hbm (%p283_p13), %s1156_s3, %s555_s30  ;;  %p728_p7 = scmp.ne.s32.totalorder (%p283_p13), %s1109_s28, %s727_s22 }
  0x84   : >> { %305 = vrot.lane.b32.xlu0 %v290_v10, %s814_s20  ;;  %v319_v54 = vsub.f32 %v317_v48, %v290_v10  ;;  %p1174_p6 = scmp.ne.s32.totalorder (%p283_p13), %s1163_s23, 0  ;;  %s816_s25 = smov (%p283_p13), [#allocation8]  }
  0x85   : >> { %v344_v49 = vsel %vm313_vm2, %v342_v43, %v343_v42  ;;  %v345_v50 = vsel %vm313_vm2, %v343_v42, %v342_v43  ;;  %v358_v57 = vsub.f32 %v334_v51, %v318_v53  ;;  %s731_s16 = sshll.u32 (%p283_p13), %s816_s25, 4  ;;  %s732_s16 = int_to_ptr.vmem [resolvable:$false] %s731_s16 }
  0x86   : >> { %338 = vrot.lane.b32.xlu1 %v302_v11, %s814_s20  ;;  %v346_v55 = vadd.f32 %v344_v49, %v301_v12  ;;  %v347_v56 = vadd.f32 %v345_v50, %v302_v11  ;;  %v359_v58 = vsub.f32 %v335_v52, %v319_v54  ;;  %p729_p9 = pnand (%p283_p13), %p728_p7, %p1174_p6  ;;  %s733_s26 = scalar_lea.vmem (%p283_p13), %s732_s16, 1536 }
  0x87   : > { %p734_p0 = scmp.lt.s32.totalorder (%p283_p13), %s1109_s28, %s732_s16  ;;  %p735_p8 = scmp.lt.s32.totalorder (%p283_p13), %s733_s26, %s727_s22 }
  0x88   : >> { %336 = vrot.lane.b32.xlu0 %v301_v12, %s814_s20  ;;  %v356_v59 = vmul.f32 0.5, %v346_v55  ;;  %v357_v60 = vmul.f32 0.5, %v347_v56  ;;  %p730_p12 = pneg (%p283_p13), %p729_p9 }
  0x89   : > { %p736_p10 = por (%p283_p13), %p735_p8, %p734_p0 }
  0x8a   : >> { %v360_v61 = vmul.f32 %v358_v57, %v356_v59  ;;  %v361_v62 = vmul.f32 %v359_v58, %v357_v60 }
  0x8b   : > { %p737_p11 = pnand (%p283_p13), %p736_p10, %p730_p12 }
  0x8c   : >> { %v362_v63 = vadd.f32 %v360_v61, %v318_v53  ;;  %v363_v0 = vadd.f32 %v361_v62, %v319_v54 }
  0x8e   : >> { %v370_v5 = vrot.slane %v362_v63, 7  ;;  %v371_v7 = vrot.slane %v363_v0, 7 }
  0xf0   : >> { %v321_v13 = vpop.permute.xlu1 %320 }
  0xf1   : >> { %v324_v16 = vsel %vm275_vm0, 0.0, %v321_v13 }
  0xf2   : >> { %v304_v14 = vpop.permute.xlu0 %303  ;;  %v326_v23 = vsub.f32 %v324_v16, %v1072_v4  ;;  %v373_v4 = vsel %vm372_vm3, %v370_v5, %v371_v7 }
  0xf3   : >> { %v307_v17 = vsel %vm275_vm0, 0.0, %v304_v14 }
  0xf4   : >> { %v323_v15 = vpop.permute.xlu1 %322  ;;  %v309_v24 = vsub.f32 %v307_v17, %v289_v6  ;;  %v376_v6 = vsub.f32 %v373_v4, %v363_v0 }
  0xf5   : >> { %v325_v18 = vsel %vm275_vm0, 0.0, %v323_v15 }
  0xf6   : >> { %v306_v19 = vpop.permute.xlu0 %305  ;;  %v327_v21 = vsub.f32 %v325_v18, %v293_v8  ;;  %v350_v31 = vsub.f32 %v326_v23, %v309_v24  ;;  %v374_v8 = vsel %vm372_vm3, %v371_v7, %v370_v5 }
  0xf7   : >> { %v308_v20 = vsel %vm275_vm0, 0.0, %v306_v19 }
  0xf8   : >> { %v310_v22 = vsub.f32 %v308_v20, %v290_v10  ;;  %v339_v25 = vpop.permute.xlu1 %338  ;;  %v375_v10 = vsub.f32 %v374_v8, %v362_v63 }
  0xf9   : >> { %v341_v26 = vadd.f32 %v339_v25, %v302_v11 }
  0xfa   : >> { %v337_v27 = vpop.permute.xlu0 %336  ;;  %v351_v29 = vsub.f32 %v327_v21, %v310_v22 }
  0xfb   : >> { %v340_v28 = vadd.f32 %v337_v27, %v301_v12  ;;  %v349_v30 = vmul.f32 0.5, %v341_v26 }
  0xfd   : >> { %v348_v32 = vmul.f32 0.5, %v340_v28  ;;  %v353_v33 = vmul.f32 %v351_v29, %v349_v30 }
  0xff   : >> { %v352_v34 = vmul.f32 %v350_v31, %v348_v32  ;;  %v355_v35 = vadd.f32 %v353_v33, %v310_v22 }
 0x101   : >> { %v354_v36 = vadd.f32 %v352_v34, %v309_v24  ;;  %366 = vrot.lane.b32.xlu1 %v355_v35, %s815_s0 }
 0x103   : >> { %364 = vrot.lane.b32.xlu0 %v354_v36, %s815_s0 }
 0x173   : >> { %v367_v9 = vpop.permute.xlu1 %366 }
 0x174   : >> { %v369_v11 = vsub.f32 %v367_v9, %v355_v35  ;;  %285 = sbr.rel (!%p283_p13) target bundleno = 123 (0x7b), region = 112 }
 0x175   : >> { %v365_v12 = vpop.permute.xlu0 %364 }
 0x176   : >> { %v368_v13 = vsub.f32 %v365_v12, %v354_v36  ;;  %v378_v14 = vadd.f32 %v376_v6, %v369_v11 }
 0x178   : >> { %v377_v15 = vadd.f32 %v375_v10, %v368_v13  ;;  %381 = vst [vmem:[%s379_s4 + $0x8] sm:$0xff] %v378_v14 }
 0x17a   : >> { %380 = vst [vmem:[%s379_s4] sm:$0xff] %v377_v15 }
 0x17b   : > { %740 = shalt.err (!%p737_p11)
}
 0x17c   : > { %s741_s29 = scalar_lea.hbm %s1107_s5, 768  ;;  %s745_s17 = scalar_lea.hbm %s1156_s3, 1536 }
 0x17d   : > { %p742_p4 = scmp.ne.s32.totalorder %s1107_s5, %s741_s29  ;;  %p746_p2 = scmp.lt.u32.totalorder %s1107_s5, %s1156_s3 }
 0x17e   : > { %p747_p1 = scmp.lt.u32.totalorder %s745_s17, %s741_s29  ;;  %p749_p7 = scmp.lt.u32.totalorder %s741_s29, %s1107_s5 }
 0x17f   : > { %p743_p3 = pnand %p742_p4, %p1174_p6 }
 0x180   : > { %p748_p13 = por %p747_p1, %p746_p2 }
 0x181   : > { %p744_p5 = pneg %p743_p3 }
 0x182   : > { %p750_p9 = por %p749_p7, %p748_p13 }
 0x184   : > { %p751_p12 = pnand %p750_p9, %p744_p5 }
 0x186   : > { %754 = shalt.err (!%p751_p12)
}
 0x187   : > { %s817_s20 = smov 128   ;;  %s818_s0 = smov 8  }
 0x188   : > { %571 = dma.vmem_to_hbm [thread:$0]  (%p1174_p6), %s1109_s28, 768, %s1107_s5, %s383_s7, %s817_s20, %s817_s20, %s818_s0  }
 0x189 PF: > { %s412_s4 = sand.u32 1, %s789_s12   ;;  %p1175_p0 = scmp.ne.s32.totalorder %s1164_s24, 0 }
 0x18a   : > { %p1176_p8 = scmp.ge.s32.totalorder %s801_s15, 2  ;;  %s413_s30 = scalar_lea.sflag [#allocation4], %s412_s4 }
 0x18c   : > { %p584_p10 = pnand %p1176_p8, %p1175_p0 }
 0x18e   : > { %784 = dma.done.wait (!%p584_p10), %s413_s30, 768  }
 0x18f   : > { %786 = vsyncadd (!%p584_p10), %s413_s30, 4294966528  ;;  %p19_p11 = scmp.ge.s32.totalorder %s864_s18, 4   ;;  %s1177_s12 = smov %s793_s13 }
 0x190   : > { %s1178_s13 = smov %s797_s14  ;;  %s1179_s14 = smov %s876_s21 }
 0x191   : > { %s1180_s15 = smov %s864_s18  ;;  %21 = sbr.rel (!%p19_p11) target bundleno = 9 (0x9), region = 123 }
 0x198   :  { %418 = vsyncpa [#allocation3], 1 }
 0x199   :  { %420 = vsyncpa [#allocation3 + $0x1], 1 }
 0x19a   :  { %421 = vsyncpa [#allocation6], 1 }
 0x19b   :  { %423 = vsyncpa [#allocation6 + $0x1], 1 }
 0x19c   :  { %424 = vsyncpa [#allocation4], 1 }
 0x19d   :  { %426 = vsyncpa [#allocation4 + $0x1], 1 }

</bundles_post_ra>
